<compile_context>
chip_gen: v7x
topology: tpu7x:2x2x1
jax: 0.10.0
libtpu: 0.0.40
codegen_flags: <defaults>
</compile_context>

<pallas_src>
import jax
import jax.numpy as jnp
from jax.experimental import pallas as pl
from jax.experimental.pallas import tpu as pltpu


def _round_up(x, m):
    return (x + m - 1) // m * m


def sgc_kernel(p_ref, xw_ref, b_ref, a_ref, o_ref, q_ref, acc_ref):
    # Grid: (layer l, A-column tile j, A-row / contraction tile k), k innermost.
    l = pl.program_id(0)
    j = pl.program_id(1)
    k = pl.program_id(2)
    nl = pl.num_programs(0)
    nj = pl.num_programs(1)
    nk = pl.num_programs(2)

    n_blk, gp, t = q_ref.shape         # q stored as k-blocks: (n_blk, GP, T)
    cp = o_ref.shape[1]

    # Very first grid step: seed propagation state with the pooling matrix P,
    # so that after L layers q = P @ A^L  (associativity of the chain).
    @pl.when((l == 0) & (j == 0) & (k == 0))
    def _():
        q_ref[...] = p_ref[...]

    # Start of the contraction loop for this output-column block: zero it.
    @pl.when(k == 0)
    def _():
        acc_ref[j] = jnp.zeros((gp, t), jnp.float32)

    # acc[j-block] += q[k-block] @ A[k-block, j-block]
    # A is streamed as bf16 (exact integer counts); accumulate in f32.
    a_tile = a_ref[...].astype(jnp.float32)
    acc_ref[j] += jnp.dot(q_ref[k], a_tile, preferred_element_type=jnp.float32)

    layer_done = (j == nj - 1) & (k == nk - 1)

    # End of an intermediate layer: commit acc -> q for the next layer.
    @pl.when(layer_done & (l < nl - 1))
    def _():
        q_ref[...] = acc_ref[...]

    # End of the last layer:  out = (P A^L) @ (X W^T) + b.
    @pl.when(layer_done & (l == nl - 1))
    def _():
        pooled = jnp.zeros((gp, cp), jnp.float32)
        for kk in range(n_blk):  # static, unrolled over k-blocks of q / rows of XW
            pooled = pooled + jnp.dot(acc_ref[kk], xw_ref[kk],
                                      preferred_element_type=jnp.float32)
        o_ref[...] = (pooled + b_ref[...]).astype(o_ref.dtype)


def sgc_forward(x, edge_index, batch, weight, bias, *, num_layers, num_graphs,
                pooling="mean", tile=1024):
    assert num_layers >= 1
    N, F = x.shape
    C = weight.shape[0]
    G = num_graphs

    # Square A tile; pad N so tiles divide evenly (lanes multiple of 128).
    T = min(_round_up(tile, 128), _round_up(N, 128))
    NP = _round_up(N, T)
    CP = _round_up(C, 128)
    GP = _round_up(G, 8)
    n_blk = NP // T            # same count of row- and column-tiles of A

    # Dense adjacency; duplicate edges sum (matches torch.spmm on COO of ones).
    # Small integer counts are exact in bf16; bf16 halves A's HBM traffic.
    A = (jnp.zeros((NP, NP), jnp.float32)
         .at[edge_index[0], edge_index[1]].add(1.0)
         .astype(jnp.bfloat16))

    # Pooling matrix P (mean: rows sum to 1 per graph), computed pre-padding.
    onehot = (batch[None, :] == jnp.arange(G)[:, None]).astype(jnp.float32)
    if pooling == "mean":
        counts = jnp.maximum(onehot.sum(axis=1, keepdims=True), 1.0)
        onehot = onehot / counts
    elif pooling in ("sum", "add"):
        pass
    else:
        raise ValueError(f"unsupported pooling: {pooling}")
    P = jnp.zeros((GP, NP), jnp.float32).at[:G, :N].set(onehot)
    # Blocked layout matching the q scratch: (n_blk, GP, T).
    P_blk = P.reshape(GP, n_blk, T).transpose(1, 0, 2)

    # Fold the classifier into the features outside the kernel (exact algebra):
    #   (P A^L X) W^T + b  ==  (P A^L) (X W^T) + b
    # The kernel then only carries an (NP, CP) slab instead of X and W.
    XW = jnp.dot(x.astype(jnp.float32), weight.T.astype(jnp.float32),
                 precision=jax.lax.Precision.HIGHEST)                 # (N, C)
    XWp = jnp.zeros((NP, CP), jnp.float32).at[:N, :C].set(XW)
    XW_blk = XWp.reshape(n_blk, T, CP)                                # row blocks
    Bp = jnp.zeros((1, CP), jnp.float32).at[0, :C].set(bias.astype(jnp.float32))

    flops = (2 * num_layers * GP * NP * NP          # q @ A per layer
             + 2 * GP * NP * CP)                    # q @ (X W^T)
    bytes_accessed = (num_layers * NP * NP * 2      # A streamed per layer (bf16)
                      + NP * CP * 4                 # XW
                      + GP * NP * 4                 # P
                      + CP * 4 + GP * CP * 4)

    # Working-set-derived VMEM limit (conservative: assume double buffering on
    # every operand), capped at 64 MiB so it is valid on v7x as well.
    vmem_est = (2 * T * T * 2                       # A tiles (bf16), 2 buffers
                + 2 * n_blk * GP * T * 4            # P input
                + 2 * NP * CP * 4                   # XW input
                + 2 * n_blk * GP * T * 4            # q + acc scratch
                + 4 * CP * 4 + 2 * GP * CP * 4)     # bias + output
    vmem_limit = int(min(64 * 1024 * 1024,
                         max(32 * 1024 * 1024, int(vmem_est * 1.5))))

    grid_spec = pltpu.PrefetchScalarGridSpec(
        num_scalar_prefetch=0,
        grid=(num_layers, n_blk, n_blk),
        in_specs=[
            pl.BlockSpec((n_blk, GP, T), lambda l, j, k: (0, 0, 0)),  # P (blocked)
            pl.BlockSpec((n_blk, T, CP), lambda l, j, k: (0, 0, 0)),  # X @ W^T
            pl.BlockSpec((1, CP), lambda l, j, k: (0, 0)),            # bias
            pl.BlockSpec((T, T), lambda l, j, k: (k, j)),             # A (streamed)
        ],
        out_specs=pl.BlockSpec((GP, CP), lambda l, j, k: (0, 0)),
        scratch_shapes=[pltpu.VMEM((n_blk, GP, T), jnp.float32),   # q  (state)
                        pltpu.VMEM((n_blk, GP, T), jnp.float32)],  # acc (next q)
    )

    out_padded = pl.pallas_call(
        sgc_kernel,
        out_shape=jax.ShapeDtypeStruct((GP, CP), jnp.float32),
        grid_spec=grid_spec,
        compiler_params=pltpu.CompilerParams(
            # q/acc carry state across every grid axis -> nothing may be
            # sharded across TensorCores; all axes are sequential.
            dimension_semantics=("arbitrary", "arbitrary", "arbitrary"),
            vmem_limit_bytes=vmem_limit),
        cost_estimate=pl.CostEstimate(flops=flops, transcendentals=0,
                                      bytes_accessed=bytes_accessed),
    )(P_blk, XW_blk, Bp, A)

    return out_padded[:G, :C]


def sgc_reference(x, edge_index, batch, weight, bias, *, num_layers, num_graphs):
    N = x.shape[0]
    A = jnp.zeros((N, N), jnp.float32).at[edge_index[0], edge_index[1]].add(1.0)
    h = x.astype(jnp.float32)
    for _ in range(num_layers):
        h = A @ h
    sums = jax.ops.segment_sum(h, batch, num_segments=num_graphs)
    counts = jax.ops.segment_sum(jnp.ones((N, 1), jnp.float32), batch,
                                 num_segments=num_graphs)
    pooled = sums / jnp.maximum(counts, 1.0)
    return pooled @ weight.T.astype(jnp.float32) + bias.astype(jnp.float32)


if __name__ == "__main__":
    # Small synthetic graph batch: 4 graphs x 8 nodes each = 32 nodes.
    num_features = 16
    num_classes = 8
    num_layers = 2
    num_nodes = 32
    num_graphs = 4
    num_edges = 96

    key = jax.random.PRNGKey(0)
    kx, ke1, ke2, kw, kb = jax.random.split(key, 5)

    x = jax.random.normal(kx, (num_nodes, num_features), dtype=jnp.float32)
    edge_index = jnp.stack([
        jax.random.randint(ke1, (num_edges,), 0, num_nodes),
        jax.random.randint(ke2, (num_edges,), 0, num_nodes),
    ], axis=0)
    batch = jnp.repeat(jnp.arange(num_graphs, dtype=jnp.int32),
                       num_nodes // num_graphs)

    # Deterministic Linear(num_features, num_classes) params (PyTorch-style uniform).
    bound = 1.0 / (num_features ** 0.5)
    weight = jax.random.uniform(kw, (num_classes, num_features), jnp.float32,
                                -bound, bound)
    bias = jax.random.uniform(kb, (num_classes,), jnp.float32, -bound, bound)

    out = sgc_forward(x, edge_index, batch, weight, bias,
                      num_layers=num_layers, num_graphs=num_graphs,
                      pooling="mean")
    out = jax.block_until_ready(out)

    ref = sgc_reference(x, edge_index, batch, weight, bias,
                        num_layers=num_layers, num_graphs=num_graphs)

    assert out.shape == (num_graphs, num_classes)
    assert jnp.allclose(out, ref, rtol=1e-4, atol=1e-4), (out, ref)
    print("KERNEL_OK")
</pallas_src>

<mosaic_0001>
module attributes {stable_mosaic.version = 11 : i64} {
  func.func @sgc_kernel(%arg0: i32, %arg1: i32, %arg2: i32, %arg3: memref<1x8x128xf32, #tpu.memory_space<vmem>>, %arg4: memref<1x128x128xf32, #tpu.memory_space<vmem>>, %arg5: memref<1x128xf32, #tpu.memory_space<vmem>>, %arg6: memref<128x128xbf16, #tpu.memory_space<vmem>>, %arg7: memref<8x128xf32, #tpu.memory_space<vmem>>, %arg8: memref<1x8x128xf32, #tpu.memory_space<vmem>>, %arg9: memref<1x8x128xf32, #tpu.memory_space<vmem>>) attributes {dimension_semantics = [#tpu.dimension_semantics<arbitrary>, #tpu.dimension_semantics<arbitrary>, #tpu.dimension_semantics<arbitrary>], iteration_bounds = array<i64: 2, 1, 1>, scalar_prefetch = 0 : i64, scratch_operands = 2 : i64, tpu.core_type = #tpu.core_type<tc>, window_params = [{pipeline_mode = #tpu.pipeline_mode<synchronous>, transform_indices = @transform_0, window_bounds = array<i64: 1, 8, 128>}, {pipeline_mode = #tpu.pipeline_mode<synchronous>, transform_indices = @transform_1, window_bounds = array<i64: 1, 128, 128>}, {pipeline_mode = #tpu.pipeline_mode<synchronous>, transform_indices = @transform_2, window_bounds = array<i64: 1, 128>}, {transform_indices = @transform_3, window_bounds = array<i64: 128, 128>}, {pipeline_mode = #tpu.pipeline_mode<synchronous>, transform_indices = @transform_4, window_bounds = array<i64: 8, 128>}]} {
    %c0_i32 = arith.constant 0 : i32
    %0 = arith.cmpi eq, %arg0, %c0_i32 : i32
    %c0_i32_0 = arith.constant 0 : i32
    %1 = arith.cmpi eq, %arg1, %c0_i32_0 : i32
    %2 = arith.andi %0, %1 : i1
    %c0_i32_1 = arith.constant 0 : i32
    %3 = arith.cmpi eq, %arg2, %c0_i32_1 : i32
    %4 = arith.andi %2, %3 : i1
    %5 = arith.extui %4 : i1 to i32
    %c0_i32_2 = arith.constant 0 : i32
    %6 = arith.cmpi ne, %5, %c0_i32_2 : i32
    scf.if %6 {
      %c0_17 = arith.constant 0 : index
      %c0_18 = arith.constant 0 : index
      %c0_19 = arith.constant 0 : index
      %35 = vector.load %arg3[%c0_17, %c0_18, %c0_19] : memref<1x8x128xf32, #tpu.memory_space<vmem>>, vector<1x8x128xf32>
      %c0_20 = arith.constant 0 : index
      %c0_21 = arith.constant 0 : index
      %c0_22 = arith.constant 0 : index
      %36 = vector.load %arg8[%c0_20, %c0_21, %c0_22] : memref<1x8x128xf32, #tpu.memory_space<vmem>>, vector<1x8x128xf32>
      tpu.vector_store %arg8[%c0_20, %c0_21, %c0_22], %35 {strides = array<i32>} : memref<1x8x128xf32, #tpu.memory_space<vmem>>, vector<1x8x128xf32>,
    } else {
    }
    %c0_i32_3 = arith.constant 0 : i32
    %7 = arith.cmpi eq, %arg2, %c0_i32_3 : i32
    %8 = arith.extui %7 : i1 to i32
    %c0_i32_4 = arith.constant 0 : i32
    %9 = arith.cmpi ne, %8, %c0_i32_4 : i32
    scf.if %9 {
      %cst_17 = arith.constant 0.000000e+00 : f32
      %35 = vector.broadcast %cst_17 : f32 to vector<8x128xf32>
      %36 = arith.index_cast %arg1 : i32 to index
      %c0_18 = arith.constant 0 : index
      %c0_19 = arith.constant 0 : index
      %37 = vector.load %arg9[%36, %c0_18, %c0_19] : memref<1x8x128xf32, #tpu.memory_space<vmem>>, vector<1x8x128xf32>
      %38 = vector.shape_cast %37 : vector<1x8x128xf32> to vector<8x128xf32>
      %39 = vector.shape_cast %35 : vector<8x128xf32> to vector<1x8x128xf32>
      tpu.vector_store %arg9[%36, %c0_18, %c0_19], %39 {strides = array<i32>} : memref<1x8x128xf32, #tpu.memory_space<vmem>>, vector<1x8x128xf32>,
    } else {
    }
    %c0 = arith.constant 0 : index
    %c0_5 = arith.constant 0 : index
    %10 = vector.load %arg6[%c0, %c0_5] : memref<128x128xbf16, #tpu.memory_space<vmem>>, vector<128x128xbf16>
    %11 = arith.extf %10 : vector<128x128xbf16> to vector<128x128xf32>
    %12 = arith.index_cast %arg1 : i32 to index
    %c0_6 = arith.constant 0 : index
    %c0_7 = arith.constant 0 : index
    %13 = vector.load %arg9[%12, %c0_6, %c0_7] : memref<1x8x128xf32, #tpu.memory_space<vmem>>, vector<1x8x128xf32>
    %14 = vector.shape_cast %13 : vector<1x8x128xf32> to vector<8x128xf32>
    %15 = arith.index_cast %arg2 : i32 to index
    %c0_8 = arith.constant 0 : index
    %c0_9 = arith.constant 0 : index
    %16 = vector.load %arg8[%15, %c0_8, %c0_9] : memref<1x8x128xf32, #tpu.memory_space<vmem>>, vector<1x8x128xf32>
    %17 = vector.shape_cast %16 : vector<1x8x128xf32> to vector<8x128xf32>
    %cst = arith.constant dense<0.000000e+00> : vector<8x128xf32>
    %18 = tpu.matmul %17, %11, %cst {dimension_numbers = #tpu.dot_dimension_numbers<[1], [0], [0], [1], [0, 0, 1, 1], [], []>} : vector<8x128xf32>, vector<128x128xf32>, vector<8x128xf32> -> vector<8x128xf32>
    %19 = arith.addf %14, %18 : vector<8x128xf32>
    %20 = arith.index_cast %arg1 : i32 to index
    %c0_10 = arith.constant 0 : index
    %c0_11 = arith.constant 0 : index
    %21 = vector.load %arg9[%20, %c0_10, %c0_11] : memref<1x8x128xf32, #tpu.memory_space<vmem>>, vector<1x8x128xf32>
    %22 = vector.shape_cast %21 : vector<1x8x128xf32> to vector<8x128xf32>
    %23 = vector.shape_cast %19 : vector<8x128xf32> to vector<1x8x128xf32>
    tpu.vector_store %arg9[%20, %c0_10, %c0_11], %23 {strides = array<i32>} : memref<1x8x128xf32, #tpu.memory_space<vmem>>, vector<1x8x128xf32>,
    %c0_i32_12 = arith.constant 0 : i32
    %24 = arith.cmpi eq, %arg1, %c0_i32_12 : i32
    %c0_i32_13 = arith.constant 0 : i32
    %25 = arith.cmpi eq, %arg2, %c0_i32_13 : i32
    %26 = arith.andi %24, %25 : i1
    %c1_i32 = arith.constant 1 : i32
    %27 = arith.cmpi slt, %arg0, %c1_i32 : i32
    %28 = arith.andi %26, %27 : i1
    %29 = arith.extui %28 : i1 to i32
    %c0_i32_14 = arith.constant 0 : i32
    %30 = arith.cmpi ne, %29, %c0_i32_14 : i32
    scf.if %30 {
      %c0_17 = arith.constant 0 : index
      %c0_18 = arith.constant 0 : index
      %c0_19 = arith.constant 0 : index
      %35 = vector.load %arg9[%c0_17, %c0_18, %c0_19] : memref<1x8x128xf32, #tpu.memory_space<vmem>>, vector<1x8x128xf32>
      %c0_20 = arith.constant 0 : index
      %c0_21 = arith.constant 0 : index
      %c0_22 = arith.constant 0 : index
      %36 = vector.load %arg8[%c0_20, %c0_21, %c0_22] : memref<1x8x128xf32, #tpu.memory_space<vmem>>, vector<1x8x128xf32>
      tpu.vector_store %arg8[%c0_20, %c0_21, %c0_22], %35 {strides = array<i32>} : memref<1x8x128xf32, #tpu.memory_space<vmem>>, vector<1x8x128xf32>,
    } else {
    }
    %c1_i32_15 = arith.constant 1 : i32
    %31 = arith.cmpi eq, %arg0, %c1_i32_15 : i32
    %32 = arith.andi %26, %31 : i1
    %33 = arith.extui %32 : i1 to i32
    %c0_i32_16 = arith.constant 0 : i32
    %34 = arith.cmpi ne, %33, %c0_i32_16 : i32
    scf.if %34 {
      %cst_17 = arith.constant 0.000000e+00 : f32
      %35 = vector.broadcast %cst_17 : f32 to vector<8x128xf32>
      %c0_18 = arith.constant 0 : index
      %c0_19 = arith.constant 0 : index
      %c0_20 = arith.constant 0 : index
      %36 = vector.load %arg9[%c0_18, %c0_19, %c0_20] : memref<1x8x128xf32, #tpu.memory_space<vmem>>, vector<1x8x128xf32>
      %37 = vector.shape_cast %36 : vector<1x8x128xf32> to vector<8x128xf32>
      %c0_21 = arith.constant 0 : index
      %c0_22 = arith.constant 0 : index
      %c0_23 = arith.constant 0 : index
      %38 = vector.load %arg4[%c0_21, %c0_22, %c0_23] : memref<1x128x128xf32, #tpu.memory_space<vmem>>, vector<1x128x128xf32>
      %39 = vector.shape_cast %38 : vector<1x128x128xf32> to vector<128x128xf32>
      %cst_24 = arith.constant dense<0.000000e+00> : vector<8x128xf32>
      %40 = tpu.matmul %37, %39, %cst_24 {dimension_numbers = #tpu.dot_dimension_numbers<[1], [0], [0], [1], [0, 0, 1, 1], [], []>} : vector<8x128xf32>, vector<128x128xf32>, vector<8x128xf32> -> vector<8x128xf32>
      %41 = arith.addf %35, %40 : vector<8x128xf32>
      %c0_25 = arith.constant 0 : index
      %c0_26 = arith.constant 0 : index
      %42 = vector.load %arg5[%c0_25, %c0_26] : memref<1x128xf32, #tpu.memory_space<vmem>>, vector<1x128xf32>
      %43 = vector.broadcast %42 : vector<1x128xf32> to vector<8x128xf32>
      %44 = arith.addf %41, %43 : vector<8x128xf32>
      %c0_27 = arith.constant 0 : index
      %c0_28 = arith.constant 0 : index
      %45 = vector.load %arg7[%c0_27, %c0_28] : memref<8x128xf32, #tpu.memory_space<vmem>>, vector<8x128xf32>
      tpu.vector_store %arg7[%c0_27, %c0_28], %44 {strides = array<i32>} : memref<8x128xf32, #tpu.memory_space<vmem>>, vector<8x128xf32>,
    } else {
    }
    return
  }
  func.func @transform_0(%arg0: i32, %arg1: i32, %arg2: i32) -> (i32, i32, i32) {
    %c0_i32 = arith.constant 0 : i32
    %c0_i32_0 = arith.constant 0 : i32
    %c0_i32_1 = arith.constant 0 : i32
    %c0_i32_2 = arith.constant 0 : i32
    return %c0_i32, %c0_i32_0, %c0_i32_1 : i32, i32, i32
  }
  func.func @transform_1(%arg0: i32, %arg1: i32, %arg2: i32) -> (i32, i32, i32) {
    %c0_i32 = arith.constant 0 : i32
    %c0_i32_0 = arith.constant 0 : i32
    %c0_i32_1 = arith.constant 0 : i32
    %c0_i32_2 = arith.constant 0 : i32
    return %c0_i32, %c0_i32_0, %c0_i32_1 : i32, i32, i32
  }
  func.func @transform_2(%arg0: i32, %arg1: i32, %arg2: i32) -> (i32, i32) {
    %c0_i32 = arith.constant 0 : i32
    %c0_i32_0 = arith.constant 0 : i32
    %c0_i32_1 = arith.constant 0 : i32
    return %c0_i32, %c0_i32_0 : i32, i32
  }
  func.func @transform_3(%arg0: i32, %arg1: i32, %arg2: i32) -> (i32, i32) {
    %c0_i32 = arith.constant 0 : i32
    return %arg2, %arg1 : i32, i32
  }
  func.func @transform_4(%arg0: i32, %arg1: i32, %arg2: i32) -> (i32, i32) {
    %c0_i32 = arith.constant 0 : i32
    %c0_i32_0 = arith.constant 0 : i32
    %c0_i32_1 = arith.constant 0 : i32
    return %c0_i32, %c0_i32_0 : i32, i32
  }
}

</mosaic_0001>

<bundles_post_ra>
// kernel: tpu_custom_call.1
= control target key start
LH: loop header
LB: loop body
LE: loop exit
PB: predicated region body
PF: predicated region fallthrough
CT: control target
= control target key end

     0   :  { %9 = vsyncpa [#allocation5], 0  ;;  %s1195_s0 = inlined_call_operand.hbm [shape: f32[1,8,128], index: 0, kind: input, shape index: {}]   ;;  %s1196_s1 = inlined_call_operand.hbm [shape: f32[1,128,128], index: 1, kind: input, shape index: {}]   ;;  %s1197_s2 = inlined_call_operand.vmem [shape: f32[1,128], index: 2, kind: input, shape index: {}]   ;;  %s1198_s3 = inlined_call_operand.hbm [shape: bf16[128,128], index: 3, kind: input, shape index: {}]   ;;  %s1199_s4 = inlined_call_operand.hbm [shape: f32[8,128], index: 4, kind: output, shape index: {}]  }
   0x1   :  { %10 = vsyncpa [#allocation8], 0 }
   0x2   :  { %11 = vsyncpa [#allocation6], 0  ;;  %s1030_s15 = smov 0   ;;  %s1032_s16 = smov 0  }
   0x3   :  { %s1034_s17 = smov 0  }
   0x4 LB: > { %s991_s18 = smov [#allocation7]   ;;  %s560_s20 = sadd.s32 4294967295, %s989_s17   ;;  %s989_s17 = sphi %s1034_s17, %s17_s17   ;;  %s985_s16 = sphi %s1032_s16, %s1212_s16   ;;  %s981_s15 = sphi %s1030_s15, %s1211_s15  }
   0x5   : > { %s176_s19 = sshll.u32 %s991_s18, 4  ;;  %p561_p0 = scmp.ge.s32.totalorder %s989_s17, 1  ;;  %s1054_s19 = int_to_ptr.vmem [resolvable:$true] %s176_s19 }
   0x6   : > { %p153_p1 = scmp.lt.s32.totalorder %s989_s17, 3  ;;  %p1050_p2 = scmp.eq.s32.totalorder %s560_s20, 0 }
   0x7   : > { %s36_s24 = sadd.s32 1, %s985_s16  ;;  %s992_s26 = smov [#allocation4]  }
   0x8   : > { %s1203_s21 = scalar_select %p1050_p2, 1, 0 }
   0x9   : > { %p1056_p3 = pnand %p561_p0, %p153_p1  ;;  %p1069_p6 = scmp.ge.s32.totalorder %s36_s24, 2 }
   0xa   : > { %s166_s27 = sshll.u32 %s992_s26, 4  ;;  %s845_s30 = scalar_lea.hbm %s1196_s1, 2048  ;;  %s167_s27 = int_to_ptr.vmem [resolvable:$true] %s166_s27 }
   0xb   : > { %s1204_s22 = scalar_select %p1056_p3, 1, 0 }
   0xc   : > { %p789_p4 = pneg %p1056_p3  ;;  %p846_p7 = scmp.ne.s32.totalorder %s1196_s1, %s845_s30 }
   0xd   : > { %p852_p11 = scmp.lt.u32.totalorder %s845_s30, %s1196_s1 }
   0xe   : > { %p1064_p5 = pnand %p1050_p2, %p789_p4 }
  0x10   : > { %p1081_p8 = pneg %p1064_p5 }
  0x12   : > { %p848_p9 = pnand %p1081_p8, %p846_p7 }
  0x14   : > { %p849_p10 = pneg %p848_p9 }
  0x16   : > { %p854_p12 = pnand %p852_p11, %p849_p10 }
  0x18   : > { %857 = shalt.err (!%p854_p12)
}
  0x19   : > { %s858_s10 = scalar_lea.vmem %s1054_s19, 2048  ;;  %p866_p4 = scmp.lt.s32.totalorder %s1054_s19, %s1054_s19 }
  0x1a   : > { %p859_p13 = scmp.ne.s32.totalorder %s1054_s19, %s858_s10  ;;  %p867_p2 = scmp.lt.s32.totalorder %s858_s10, %s858_s10 }
  0x1c   : > { %p861_p0 = pnand %p859_p13, %p1081_p8  ;;  %p868_p7 = por %p867_p2, %p866_p4 }
  0x1e   : > { %p862_p1 = pneg %p861_p0 }
  0x20   : > { %p869_p9 = pnand %p868_p7, %p862_p1 }
  0x22   : > { %872 = shalt.err (!%p869_p9)
}
  0x23   : > { %s993_s11 = smov 128   ;;  %s994_s12 = smov 8  }
  0x24   : > { %795 = dma.hbm_to_vmem [thread:$0]  (!%p1064_p5), %s1196_s1, 2048, %s1054_s19, [#allocation8], %s993_s11, %s993_s11, %s994_s12  }
  0x25   : > { %s1214_s24 = smov (%p1069_p6, %s36_s24), 0  ;;  %s873_s28 = scalar_lea.hbm %s1195_s0, 128 }
  0x26   : > { %p874_p2 = scmp.ne.s32.totalorder %s1195_s0, %s873_s28  ;;  %p880_p12 = scmp.lt.u32.totalorder %s873_s28, %s1195_s0 }
  0x28   : > { %p876_p10 = pnand %p874_p2, %p1081_p8 }
  0x2a   : > { %p877_p11 = pneg %p876_p10 }
  0x2c   : > { %p882_p13 = pnand %p880_p12, %p877_p11 }
  0x2e   : > { %885 = shalt.err (!%p882_p13)
}
  0x2f   : > { %s886_s19 = scalar_lea.vmem %s167_s27, 128  ;;  %p894_p4 = scmp.lt.s32.totalorder %s167_s27, %s167_s27 }
  0x30   : > { %p887_p6 = scmp.ne.s32.totalorder %s167_s27, %s886_s19  ;;  %p895_p7 = scmp.lt.s32.totalorder %s886_s19, %s886_s19 }
  0x32   : > { %p889_p0 = pnand %p887_p6, %p1081_p8  ;;  %p896_p9 = por %p895_p7, %p894_p4 }
  0x34   : > { %p890_p1 = pneg %p889_p0 }
  0x36   : > { %p897_p3 = pnand %p896_p9, %p890_p1 }
  0x38   : > { %900 = shalt.err (!%p897_p3)
}
  0x39   : > { %792 = dma.hbm_to_vmem [thread:$0]  (!%p1064_p5), %s1195_s0, 128, %s167_s27, [#allocation5]  }
  0x3a   : > { %s995_s9 = smov [#allocation9]   ;;  %s901_s13 = scalar_lea.hbm %s1198_s3, 1024 }
  0x3b   : > { %s196_s10 = sshll.u32 %s995_s9, 4  ;;  %p902_p2 = scmp.ne.s32.totalorder %s1198_s3, %s901_s13  ;;  %s197_s10 = int_to_ptr.vmem [resolvable:$true] %s196_s10 }
  0x3c   : > { %p908_p11 = scmp.lt.u32.totalorder %s901_s13, %s1198_s3 }
  0x3d   : > { %p904_p3 = pnand %p902_p2, %p1081_p8 }
  0x3f   : > { %p905_p10 = pneg %p904_p3 }
  0x41   : > { %p910_p12 = pnand %p908_p11, %p905_p10 }
  0x43   : > { %913 = shalt.err (!%p910_p12)
}
  0x44   : > { %s914_s27 = scalar_lea.vmem %s197_s10, 1024  ;;  %p922_p1 = scmp.lt.s32.totalorder %s197_s10, %s197_s10 }
  0x45   : > { %p915_p13 = scmp.ne.s32.totalorder %s197_s10, %s914_s27  ;;  %p923_p4 = scmp.lt.s32.totalorder %s914_s27, %s914_s27 }
  0x47   : > { %p917_p6 = pnand %p915_p13, %p1081_p8  ;;  %p924_p7 = por %p923_p4, %p922_p1 }
  0x49   : > { %p918_p0 = pneg %p917_p6 }
  0x4b   : > { %p925_p9 = pnand %p924_p7, %p918_p0 }
  0x4d   : > { %928 = shalt.err (!%p925_p9)
}
  0x4e   : > { %s996_s29 = smov 64   ;;  %s997_s30 = smov 4  }
  0x4f   : > { %798 = dma.hbm_to_vmem [thread:$0]  (!%p1064_p5), %s1198_s3, 1024, %s197_s10, [#allocation8], %s996_s29, %s996_s29, %s997_s30  }
  0x50   : > { %p1208_p2 = scmp.ne.s32.totalorder %s1204_s22, 0 }
  0x51   : > { %p1209_p3 = scmp.ne.s32.totalorder (!%p1208_p2), %s1203_s21, 0 }
  0x52   : > { %212 = sbr.rel (%p1208_p2) target bundleno = 630 (0x276), region = 36 }
  0x59   : > { %968 = dma.done.wait (%p1209_p3), [#allocation5], 128  }
  0x5a   : > { %970 = vsyncadd (%p1209_p3), [#allocation5], 4294967168 }
  0x5b   : > { %972 = dma.done.wait (%p1209_p3), [#allocation8], 3072  }
  0x5c   : > { %974 = vsyncadd (%p1209_p3), [#allocation8], 4294964224  ;;  %p237_p8 = scmp.eq.s32.totalorder %s981_s15, 0 }
  0x5d   : > { %v246_v0 = vld [vmem:[#allocation4] sm:$0xff] (%p237_p8) }
  0x5e   : > { %245 = sbr.rel (!%p237_p8) target bundleno = 101 (0x65), region = 52  ;;  %247 = vst [vmem:[#allocation2] sm:$0xff] (%p237_p8), %v246_v0 }
  0x65 PF: > { %v583_v1 = vld [vmem:[#allocation9] sm:$0xff]   ;;  %v998_v2 = vmov 0.0|0.0   ;;  %vm999_vm0 = vmmov 0   ;;  %v1000_v3 = vmov 0.0   ;;  %v614_v4 = vld [vmem:[#allocation9 + $0x8] sm:$0xff]   ;;  %v615_v5 = vld [vmem:[#allocation9 + $0x10] sm:$0xff]  }
  0x66   : > { %725 = vmatprep.subr.bf16.mxu0 %v998_v2  ;;  %687 = vmatprep.mubr.msk.f32.mxu0 %vm999_vm0, %v1000_v3  ;;  %v616_v6 = vld [vmem:[#allocation9 + $0x18] sm:$0xff]   ;;  %v617_v7 = vld [vmem:[#allocation9 + $0x20] sm:$0xff]   ;;  %v618_v8 = vld [vmem:[#allocation9 + $0x28] sm:$0xff]   ;;  %p366_p5 = scmp.lt.s32.totalorder %s981_s15, 1 }
  0x67   : > { %727 = vmatpush3.bf16.msra.mxu0 %v583_v1  ;;  %v619_v9 = vld [vmem:[#allocation9 + $0x30] sm:$0xff]   ;;  %v620_v10 = vld [vmem:[#allocation9 + $0x38] sm:$0xff]   ;;  %v291_v11 = vld [vmem:[#allocation2] sm:$0xff] }
  0x68   : > { %728 = vmatprep.subr.bf16.mxu0 %v998_v2 }
  0x6b   : > { %730 = vmatpush3.bf16.msra.mxu0 %v614_v4 }
  0x6c   : > { %731 = vmatprep.subr.bf16.mxu0 %v998_v2 }
  0x6f   : > { %733 = vmatpush3.bf16.msra.mxu0 %v615_v5 }
  0x70   : > { %734 = vmatprep.subr.bf16.mxu0 %v998_v2 }
  0x73   : > { %736 = vmatpush3.bf16.msra.mxu0 %v616_v6 }
  0x74   : > { %737 = vmatprep.subr.bf16.mxu0 %v998_v2 }
  0x77   : > { %739 = vmatpush3.bf16.msra.mxu0 %v617_v7 }
  0x78   : > { %740 = vmatprep.subr.bf16.mxu0 %v998_v2 }
  0x7b   : > { %742 = vmatpush3.bf16.msra.mxu0 %v618_v8 }
  0x7c   : > { %743 = vmatprep.subr.bf16.mxu0 %v998_v2 }
  0x7f   : > { %745 = vmatpush3.bf16.msra.mxu0 %v619_v9 }
  0x80   : > { %746 = vmatprep.subr.bf16.mxu0 %v998_v2 }
  0x83   : > { %748 = vmatpush3.bf16.msra.mxu0 %v620_v10 }
  0x86   : > { %688 = vmatmul.mubr.f32.vlgmr.msra.gmra.mrb[0].mxu0 %v291_v11 }
 0x154   : > { %370 = sbr.rel (!%p366_p5) target bundleno = 355 (0x163), region = 60 }
 0x159   : > { %v358_v12 = vpop.f32.mrb[0].mxu0 }
 0x15a   : > { %v689_v13 = vpop.f32.mrb[1].mxu0  ;;  %363 = vst [vmem:[#allocation3] sm:$0xff] %v358_v12 }
 0x161   : > { %v371_v14 = vld [vmem:[#allocation3] sm:$0xff] }
 0x162   : > { %372 = vst [vmem:[#allocation2] sm:$0xff] %v371_v14 }
 0x163 PF: > { %p373_p10 = scmp.eq.s32.totalorder %s981_s15, 1 }
 0x164   : > { %v379_v15 = vld [vmem:[#allocation7] sm:$0xff] (%p373_p10)  ;;  %v380_v16 = vld [vmem:[#allocation7 + $0x8] sm:$0xff] (%p373_p10)  ;;  %v381_v17 = vld [vmem:[#allocation7 + $0x10] sm:$0xff] (%p373_p10)  ;;  %v1001_v18 = vmov (%p373_p10), 0.0|0.0   ;;  %vm1002_vm1 = vmmov (%p373_p10), 0   ;;  %v1003_v21 = vmov (%p373_p10), 0.0  }
 0x165   : > { %377 = sbr.rel (!%p373_p10) target bundleno = 605 (0x25d), region = 64  ;;  %749 = vmatprep.subr.bf16.mxu0 (%p373_p10), %v1001_v18  ;;  %v750_v19 = vpack.c.bf16 (%p373_p10), %v380_v16, %v379_v15  ;;  %v382_v20 = vld [vmem:[#allocation7 + $0x18] sm:$0xff] (%p373_p10)  ;;  %722 = vmatprep.mubr.msk.f32.mxu0 (%p373_p10), %vm1002_vm1, %v1003_v21  ;;  %v383_v23 = vld [vmem:[#allocation7 + $0x20] sm:$0xff] (%p373_p10)  ;;  %v384_v24 = vld [vmem:[#allocation7 + $0x28] sm:$0xff] (%p373_p10) }
 0x166   : > { %v753_v22 = vpack.c.bf16 (%p373_p10), %v382_v20, %v381_v17  ;;  %v756_v25 = vpack.c.bf16 (%p373_p10), %v384_v24, %v383_v23  ;;  %v385_v26 = vld [vmem:[#allocation7 + $0x30] sm:$0xff] (%p373_p10)  ;;  %v386_v27 = vld [vmem:[#allocation7 + $0x38] sm:$0xff] (%p373_p10)  ;;  %v387_v29 = vld [vmem:[#allocation7 + $0x40] sm:$0xff] (%p373_p10) }
 0x167   : > { %751 = vmatpush3.bf16.msra.mxu0 (%p373_p10), %v750_v19  ;;  %v759_v28 = vpack.c.bf16 (%p373_p10), %v386_v27, %v385_v26  ;;  %v388_v30 = vld [vmem:[#allocation7 + $0x48] sm:$0xff] (%p373_p10)  ;;  %v389_v32 = vld [vmem:[#allocation7 + $0x50] sm:$0xff] (%p373_p10)  ;;  %v390_v33 = vld [vmem:[#allocation7 + $0x58] sm:$0xff] (%p373_p10) }
 0x168   : > { %752 = vmatprep.subr.bf16.mxu0 (%p373_p10), %v1001_v18  ;;  %v762_v31 = vpack.c.bf16 (%p373_p10), %v388_v30, %v387_v29  ;;  %v765_v34 = vpack.c.bf16 (%p373_p10), %v390_v33, %v389_v32  ;;  %v391_v35 = vld [vmem:[#allocation7 + $0x60] sm:$0xff] (%p373_p10)  ;;  %v392_v36 = vld [vmem:[#allocation7 + $0x68] sm:$0xff] (%p373_p10)  ;;  %v393_v38 = vld [vmem:[#allocation7 + $0x70] sm:$0xff] (%p373_p10) }
 0x169   : > { %v768_v37 = vpack.c.bf16 (%p373_p10), %v392_v36, %v391_v35  ;;  %v394_v39 = vld [vmem:[#allocation7 + $0x78] sm:$0xff] (%p373_p10)  ;;  %v378_v41 = vld [vmem:[#allocation3] sm:$0xff] (%p373_p10)  ;;  %v573_v42 = vld [vmem:[%s1197_s2] ss:$0 sm:$0xff] (%p373_p10) }
 0x16a   : > { %v771_v40 = vpack.c.bf16 (%p373_p10), %v394_v39, %v393_v38 }
 0x16b   : > { %754 = vmatpush3.bf16.msra.mxu0 (%p373_p10), %v753_v22 }
 0x16c   : > { %755 = vmatprep.subr.bf16.mxu0 %v1001_v18 }
 0x16f   : > { %757 = vmatpush3.bf16.msra.mxu0 %v756_v25 }
 0x170   : > { %758 = vmatprep.subr.bf16.mxu0 %v1001_v18 }
 0x173   : > { %760 = vmatpush3.bf16.msra.mxu0 %v759_v28 }
 0x174   : > { %761 = vmatprep.subr.bf16.mxu0 %v1001_v18 }
 0x177   : > { %763 = vmatpush3.bf16.msra.mxu0 %v762_v31 }
 0x178   : > { %764 = vmatprep.subr.bf16.mxu0 %v1001_v18 }
 0x17b   : > { %766 = vmatpush3.bf16.msra.mxu0 %v765_v34 }
 0x17c   : > { %767 = vmatprep.subr.bf16.mxu0 %v1001_v18 }
 0x17f   : > { %769 = vmatpush3.bf16.msra.mxu0 %v768_v37 }
 0x180   : > { %770 = vmatprep.subr.bf16.mxu0 %v1001_v18 }
 0x183   : > { %772 = vmatpush3.bf16.msra.mxu0 %v771_v40 }
 0x186   : > { %723 = vmatmul.mubr.f32.vlgmr.msra.gmra.mrb[0].mxu0 %v378_v41 }
 0x259   : > { %v468_v43 = vpop.f32.mrb[0].mxu0 }
 0x25a   : > { %v469_v44 = vadd.f32 %v573_v42, %v468_v43  ;;  %v724_v45 = vpop.f32.mrb[1].mxu0 }
 0x25c   : > { %472 = vst [vmem:[#allocation10] sm:$0xff] %v469_v44 }
 0x25d PF: > { %p1160_p11 = scmp.eq.s32.totalorder %s560_s20, 1  ;;  %s1004_s23 = smov [#allocation10]  }
 0x25e   : > { %s480_s7 = sshll.u32 %s1004_s23, 4  ;;  %s481_s7 = int_to_ptr.vmem [resolvable:$true] %s480_s7 }
 0x25f   : > { %s929_s19 = scalar_lea.vmem %s481_s7, 128  ;;  %p936_p0 = scmp.lt.s32.totalorder %s481_s7, %s481_s7 }
 0x260   : > { %p930_p12 = scmp.ne.s32.totalorder %s481_s7, %s929_s19  ;;  %p937_p1 = scmp.lt.s32.totalorder %s929_s19, %s929_s19 }
 0x262   : > { %p931_p13 = pnand %p930_p12, %p1160_p11  ;;  %p938_p4 = por %p937_p1, %p936_p0 }
 0x264   : > { %p932_p6 = pneg %p931_p13 }
 0x266   : > { %p939_p7 = pnand %p938_p4, %p932_p6 }
 0x268   : > { %942 = shalt.err (!%p939_p7)
}
 0x269   : > { %s943_s20 = scalar_lea.hbm %s1199_s4, 128 }
 0x26a   : > { %p944_p9 = scmp.ne.s32.totalorder %s1199_s4, %s943_s20  ;;  %p949_p8 = scmp.lt.u32.totalorder %s943_s20, %s1199_s4 }
 0x26c   : > { %p945_p2 = pnand %p944_p9, %p1160_p11 }
 0x26e   : > { %p946_p3 = pneg %p945_p2 }
 0x270   : > { %p951_p5 = pnand %p949_p8, %p946_p3 }
 0x272   : > { %954 = shalt.err (!%p951_p5)
}
 0x273   : > { %786 = dma.vmem_to_hbm [thread:$0]  (%p1160_p11), %s481_s7, 128, %s1199_s4, [#allocation6]  }
 0x274   : > { %976 = dma.done.wait (%p1160_p11), [#allocation6], 128  }
 0x275   : > { %978 = vsyncadd (%p1160_p11), [#allocation6], 4294967168 }
 0x276 PF: > { %s17_s17 = sadd.s32 1, %s989_s17   ;;  %s1211_s15 = smov %s985_s16 }
 0x277   : > { %p14_p10 = scmp.ge.s32.totalorder %s17_s17, 4   ;;  %s1212_s16 = smov %s1214_s24 }
 0x279   :  { %16 = sbr.rel (!%p14_p10) target bundleno = 4 (0x4), region = 93 }
 0x280   :  { %493 = vsyncpa [#allocation5], 1 }
 0x281   :  { %495 = vsyncpa [#allocation5 + $0x1], 1 }
 0x282   :  { %496 = vsyncpa [#allocation8], 1 }
 0x283   :  { %497 = vsyncpa [#allocation6], 1 }
 0x284   :  { %499 = vsyncpa [#allocation6 + $0x1], 1 }

</bundles_post_ra>
